<compile_context>
chip_gen: v5e
topology: v5e:2x2
jax: 0.10.0
libtpu: 0.0.40
codegen_flags: <defaults>
</compile_context>

<pallas_src>
import functools

import jax
import jax.numpy as jnp
from jax.experimental import pallas as pl
from jax.experimental.pallas import tpu as pltpu

LANE = 128     # TPU vreg lane width (feature / last-dim alignment)
SUBLANE = 16   # bf16 sublane packing (also satisfies the 8-row rule for f32 blocks)


def _round_up(n, m):
    return pl.cdiv(n, m) * m


def _pad_to(a, shape):
    return jnp.pad(a, [(0, t - s) for s, t in zip(a.shape, shape)])


def _mlp_kernel(x_ref, w1_ref, b1_ref, w2_ref, b2_ref, o_ref):
    # Two MXU matmuls (bf16 inputs, f32 accumulation) + f32 bias adds + ReLU (VPU).
    h = jnp.dot(x_ref[...], w1_ref[...], preferred_element_type=jnp.float32)
    h = jnp.maximum(h + b1_ref[...], 0.0)
    y = jnp.dot(h.astype(jnp.bfloat16), w2_ref[...],
                preferred_element_type=jnp.float32)
    o_ref[...] = (y + b2_ref[...]).astype(o_ref.dtype)   # lane-dense store


def pack_params(w1, b1, w2, b2):
    """One-time parameter packing: pad feature dims to 128 lanes and cast.

    Weights -> bf16 (MXU inputs), biases -> f32 (VPU adds). Padded regions are
    zero, so the math is unchanged. Call once; reuse the result every forward.
    """
    d_in, h1 = w1.shape
    d_out = w2.shape[1]
    Dp = _round_up(d_in, LANE)
    Hp = _round_up(h1, LANE)
    Op = _round_up(d_out, LANE)
    w1_p = _pad_to(w1.astype(jnp.bfloat16), (Dp, Hp))
    b1_p = _pad_to(jnp.reshape(b1, (1, h1)).astype(jnp.float32), (1, Hp))
    w2_p = _pad_to(w2.astype(jnp.bfloat16), (Hp, Op))
    b2_p = _pad_to(jnp.reshape(b2, (1, d_out)).astype(jnp.float32), (1, Op))
    return w1_p, b1_p, w2_p, b2_p


@functools.partial(jax.jit, static_argnames=("d_out", "batch_tile", "out_dtype"))
def net_forward_packed(x, w1_p, b1_p, w2_p, b2_p, *, d_out,
                       batch_tile=512, out_dtype=jnp.float32):
    """Forward pass of Net (Linear -> ReLU -> Linear) on pre-packed params.

    x    : (B, D_in) float32 (or bf16)
    w1_p : (Dp, Hp) bf16, b1_p: (1, Hp) f32   (from pack_params)
    w2_p : (Hp, Op) bf16, b2_p: (1, Op) f32
    returns (B, d_out) in out_dtype (f32 by default).
    """
    B, _ = x.shape
    Dp, Hp = w1_p.shape
    Op = w2_p.shape[1]

    # Adaptive batch tile:
    #   * small B: round up to 16 rows only (not 128) -> ~8x less x DMA / output store
    #   * large B: cap at batch_tile (default 512, ~85% of HBM roofline)
    #   * when the batch is big enough, split into >=2 grid steps so the
    #     "parallel" axis can shard across v7x's two TensorCores.
    TB = min(batch_tile, _round_up(B, SUBLANE))
    if B >= 2 * SUBLANE and pl.cdiv(B, TB) < 2:
        TB = _round_up(pl.cdiv(B, 2), SUBLANE)
    Bp = _round_up(B, TB)

    # Cast-then-pad (cast on the small unpadded array, pad in bf16).
    x_p = _pad_to(x.astype(jnp.bfloat16), (Bp, Dp))

    out_p = pl.pallas_call(
        _mlp_kernel,
        out_shape=jax.ShapeDtypeStruct((Bp, Op), out_dtype),
        grid=(Bp // TB,),
        in_specs=[
            pl.BlockSpec((TB, Dp), lambda i: (i, 0)),   # batch-tiled activations
            pl.BlockSpec((Dp, Hp), lambda i: (0, 0)),   # weights stay VMEM-resident
            pl.BlockSpec((1, Hp), lambda i: (0, 0)),
            pl.BlockSpec((Hp, Op), lambda i: (0, 0)),
            pl.BlockSpec((1, Op), lambda i: (0, 0)),
        ],
        out_specs=pl.BlockSpec((TB, Op), lambda i: (i, 0)),
        compiler_params=pltpu.CompilerParams(
            dimension_semantics=("parallel",)),         # dual-TC sharding on v7x
    )(x_p, w1_p, b1_p, w2_p, b2_p)

    return out_p[:B, :d_out]


def net_forward(x, w1, b1, w2, b2, **kw):
    """Convenience wrapper that packs params per call.

    For repeated calls (training / self-play generation) prefer calling
    pack_params() once and net_forward_packed() per step.
    """
    w1_p, b1_p, w2_p, b2_p = pack_params(w1, b1, w2, b2)
    return net_forward_packed(x, w1_p, b1_p, w2_p, b2_p, d_out=w2.shape[1], **kw)


def init_params(key, d_in, h1, d_out):
    """Deterministic init mimicking PyTorch nn.Linear default (uniform ±1/sqrt(fan_in))."""
    k1, k2, k3, k4 = jax.random.split(key, 4)
    bound1 = 1.0 / jnp.sqrt(d_in)
    bound2 = 1.0 / jnp.sqrt(h1)
    w1 = jax.random.uniform(k1, (d_in, h1), jnp.float32, -bound1, bound1)
    b1 = jax.random.uniform(k2, (1, h1), jnp.float32, -bound1, bound1)
    w2 = jax.random.uniform(k3, (h1, d_out), jnp.float32, -bound2, bound2)
    b2 = jax.random.uniform(k4, (1, d_out), jnp.float32, -bound2, bound2)
    return w1, b1, w2, b2


if __name__ == "__main__":
    # Tic-tac-toe style shapes: 9 board cells in, 9 move logits out.
    B, D_IN, H1, H2, D_OUT = 8, 9, 32, 16, 9  # H2 is unused by the module.

    key = jax.random.PRNGKey(0)
    kx, kp = jax.random.split(key)
    x = jax.random.normal(kx, (B, D_IN), jnp.float32)
    w1, b1, w2, b2 = init_params(kp, D_IN, H1, D_OUT)

    # Pack once (hoisted out of the per-call path), then run the forward.
    w1_p, b1_p, w2_p, b2_p = pack_params(w1, b1, w2, b2)
    out = net_forward_packed(x, w1_p, b1_p, w2_p, b2_p, d_out=D_OUT)
    out = jax.block_until_ready(out)
    assert out.shape == (B, D_OUT)
    assert out.dtype == jnp.float32

    # Reference with the same bf16-input / f32-accumulate numerics as the kernel.
    ref_bf16 = jnp.maximum(
        jnp.dot(x.astype(jnp.bfloat16), w1.astype(jnp.bfloat16),
                preferred_element_type=jnp.float32) + b1, 0.0)
    ref_bf16 = jnp.dot(ref_bf16.astype(jnp.bfloat16), w2.astype(jnp.bfloat16),
                       preferred_element_type=jnp.float32) + b2
    assert jnp.allclose(out, ref_bf16, atol=1e-2, rtol=1e-2)

    # Loose sanity check against the full-f32 PyTorch-equivalent math.
    ref_f32 = jnp.maximum(x @ w1 + b1, 0.0) @ w2 + b2
    assert jnp.allclose(out, ref_f32, atol=1e-1, rtol=1e-1)

    # Exercise the large-batch / multi-step-grid path (v7x dual-TC sharding) and
    # the optional bf16-output path once as a smoke test.
    xb = jax.random.normal(kx, (600, D_IN), jnp.float32)
    outb = net_forward_packed(xb, w1_p, b1_p, w2_p, b2_p, d_out=D_OUT,
                              out_dtype=jnp.bfloat16)
    outb = jax.block_until_ready(outb)
    assert outb.shape == (600, D_OUT) and outb.dtype == jnp.bfloat16
    refb = jnp.maximum(xb @ w1 + b1, 0.0) @ w2 + b2
    assert jnp.allclose(outb.astype(jnp.float32), refb, atol=2e-1, rtol=2e-1)

    print("KERNEL_OK")
</pallas_src>

<mosaic_0001>
module attributes {stable_mosaic.version = 11 : i64} {
  func.func @_mlp_kernel(%arg0: i32, %arg1: memref<16x128xbf16, #tpu.memory_space<vmem>>, %arg2: memref<128x128xbf16, #tpu.memory_space<vmem>>, %arg3: memref<1x128xf32, #tpu.memory_space<vmem>>, %arg4: memref<128x128xbf16, #tpu.memory_space<vmem>>, %arg5: memref<1x128xf32, #tpu.memory_space<vmem>>, %arg6: memref<16x128xf32, #tpu.memory_space<vmem>>) attributes {dimension_semantics = [#tpu.dimension_semantics<parallel>], iteration_bounds = array<i64: 1>, scalar_prefetch = 0 : i64, scratch_operands = 0 : i64, tpu.core_type = #tpu.core_type<tc>, window_params = [{transform_indices = @transform_0, window_bounds = array<i64: 16, 128>}, {pipeline_mode = #tpu.pipeline_mode<synchronous>, transform_indices = @transform_1, window_bounds = array<i64: 128, 128>}, {pipeline_mode = #tpu.pipeline_mode<synchronous>, transform_indices = @transform_2, window_bounds = array<i64: 1, 128>}, {pipeline_mode = #tpu.pipeline_mode<synchronous>, transform_indices = @transform_3, window_bounds = array<i64: 128, 128>}, {pipeline_mode = #tpu.pipeline_mode<synchronous>, transform_indices = @transform_4, window_bounds = array<i64: 1, 128>}, {transform_indices = @transform_5, window_bounds = array<i64: 16, 128>}]} {
    %c0 = arith.constant 0 : index
    %c0_0 = arith.constant 0 : index
    %0 = vector.load %arg1[%c0, %c0_0] : memref<16x128xbf16, #tpu.memory_space<vmem>>, vector<16x128xbf16>
    %c0_1 = arith.constant 0 : index
    %c0_2 = arith.constant 0 : index
    %1 = vector.load %arg2[%c0_1, %c0_2] : memref<128x128xbf16, #tpu.memory_space<vmem>>, vector<128x128xbf16>
    %cst = arith.constant dense<0.000000e+00> : vector<16x128xf32>
    %2 = tpu.matmul %0, %1, %cst {dimension_numbers = #tpu.dot_dimension_numbers<[1], [0], [0], [1], [0, 0, 1, 1], [], []>} : vector<16x128xbf16>, vector<128x128xbf16>, vector<16x128xf32> -> vector<16x128xf32>
    %c0_3 = arith.constant 0 : index
    %c0_4 = arith.constant 0 : index
    %3 = vector.load %arg3[%c0_3, %c0_4] : memref<1x128xf32, #tpu.memory_space<vmem>>, vector<1x128xf32>
    %4 = vector.broadcast %3 : vector<1x128xf32> to vector<16x128xf32>
    %5 = arith.addf %2, %4 : vector<16x128xf32>
    %cst_5 = arith.constant 0.000000e+00 : f32
    %6 = vector.broadcast %cst_5 : f32 to vector<16x128xf32>
    %7 = arith.maximumf %5, %6 : vector<16x128xf32>
    %8 = arith.truncf %7 : vector<16x128xf32> to vector<16x128xbf16>
    %c0_6 = arith.constant 0 : index
    %c0_7 = arith.constant 0 : index
    %9 = vector.load %arg4[%c0_6, %c0_7] : memref<128x128xbf16, #tpu.memory_space<vmem>>, vector<128x128xbf16>
    %cst_8 = arith.constant dense<0.000000e+00> : vector<16x128xf32>
    %10 = tpu.matmul %8, %9, %cst_8 {dimension_numbers = #tpu.dot_dimension_numbers<[1], [0], [0], [1], [0, 0, 1, 1], [], []>} : vector<16x128xbf16>, vector<128x128xbf16>, vector<16x128xf32> -> vector<16x128xf32>
    %c0_9 = arith.constant 0 : index
    %c0_10 = arith.constant 0 : index
    %11 = vector.load %arg5[%c0_9, %c0_10] : memref<1x128xf32, #tpu.memory_space<vmem>>, vector<1x128xf32>
    %12 = vector.broadcast %11 : vector<1x128xf32> to vector<16x128xf32>
    %13 = arith.addf %10, %12 : vector<16x128xf32>
    %c0_11 = arith.constant 0 : index
    %c0_12 = arith.constant 0 : index
    %14 = vector.load %arg6[%c0_11, %c0_12] : memref<16x128xf32, #tpu.memory_space<vmem>>, vector<16x128xf32>
    tpu.vector_store %arg6[%c0_11, %c0_12], %13 {strides = array<i32>} : memref<16x128xf32, #tpu.memory_space<vmem>>, vector<16x128xf32>,
    return
  }
  func.func @transform_0(%arg0: i32) -> (i32, i32) {
    %c0_i32 = arith.constant 0 : i32
    %c0_i32_0 = arith.constant 0 : i32
    return %arg0, %c0_i32 : i32, i32
  }
  func.func @transform_1(%arg0: i32) -> (i32, i32) {
    %c0_i32 = arith.constant 0 : i32
    %c0_i32_0 = arith.constant 0 : i32
    %c0_i32_1 = arith.constant 0 : i32
    return %c0_i32, %c0_i32_0 : i32, i32
  }
  func.func @transform_2(%arg0: i32) -> (i32, i32) {
    %c0_i32 = arith.constant 0 : i32
    %c0_i32_0 = arith.constant 0 : i32
    %c0_i32_1 = arith.constant 0 : i32
    return %c0_i32, %c0_i32_0 : i32, i32
  }
  func.func @transform_3(%arg0: i32) -> (i32, i32) {
    %c0_i32 = arith.constant 0 : i32
    %c0_i32_0 = arith.constant 0 : i32
    %c0_i32_1 = arith.constant 0 : i32
    return %c0_i32, %c0_i32_0 : i32, i32
  }
  func.func @transform_4(%arg0: i32) -> (i32, i32) {
    %c0_i32 = arith.constant 0 : i32
    %c0_i32_0 = arith.constant 0 : i32
    %c0_i32_1 = arith.constant 0 : i32
    return %c0_i32, %c0_i32_0 : i32, i32
  }
  func.func @transform_5(%arg0: i32) -> (i32, i32) {
    %c0_i32 = arith.constant 0 : i32
    %c0_i32_0 = arith.constant 0 : i32
    return %arg0, %c0_i32 : i32, i32
  }
}

</mosaic_0001>

<bundles_post_ra>
// kernel: net_forward_packed.1
= control target key start
LH: loop header
LB: loop body
LE: loop exit
PB: predicated region body
PF: predicated region fallthrough
CT: control target
= control target key end

     0   :  { %10 = vsyncpa [#allocation3], 0  ;;  %s433_s0 = inlined_call_operand.vmem [shape: bf16[16,128], index: 0, kind: input, shape index: {}]   ;;  %s434_s1 = inlined_call_operand.hbm [shape: bf16[128,128], index: 1, kind: input, shape index: {}]   ;;  %s435_s2 = inlined_call_operand.vmem [shape: f32[1,128], index: 2, kind: input, shape index: {}]   ;;  %s436_s3 = inlined_call_operand.hbm [shape: bf16[128,128], index: 3, kind: input, shape index: {}]   ;;  %s437_s4 = inlined_call_operand.vmem [shape: f32[1,128], index: 4, kind: input, shape index: {}]   ;;  %s438_s5 = inlined_call_operand.vmem [shape: f32[16,128], index: 5, kind: output, shape index: {}]  }
   0x1   :  { %s18_s20 = sshll.u32 %s434_s1, 4  ;;  %s19_s20 = int_to_ptr.hbm [resolvable:$true] %s18_s20 }
   0x2   :  { %11 = vsyncpa [#allocation5], 0  ;;  %s378_s21 = smov [#allocation2]   ;;  %s33_s25 = sshll.u32 %s436_s3, 4  ;;  %s34_s25 = int_to_ptr.hbm [resolvable:$true] %s33_s25 }
   0x3   :  { %s20_s22 = sshll.u32 %s378_s21, 4  ;;  %s379_s26 = smov 64   ;;  %s21_s22 = int_to_ptr.vmem [resolvable:$true] %s20_s22 }
   0x4   :  { %s380_s27 = smov 4   ;;  %s381_s28 = smov [#allocation4]  }
   0x5   :  { %26 = dma.hbm_to_vmem [thread:$0]  %s19_s20, 1024, %s21_s22, [#allocation3], %s379_s26, %s379_s26, %s380_s27  }
   0x6   :  { %s35_s29 = sshll.u32 %s381_s28, 4  ;;  %s36_s29 = int_to_ptr.vmem [resolvable:$true] %s35_s29 }
   0x7   :  { %41 = dma.hbm_to_vmem [thread:$0]  %s34_s25, 1024, %s36_s29, [#allocation5], %s379_s26, %s379_s26, %s380_s27  }
   0x8   :  { %374 = dma.done.wait [#allocation3], 1024  }
   0x9   :  { %375 = vsyncadd [#allocation3], 4294966272 }
   0xa   :  { %376 = dma.done.wait [#allocation5], 1024  }
   0xb   :  { %377 = vsyncadd [#allocation5], 4294966272  ;;  %v311_v0 = vld [vmem:[#allocation2 + $0x38] sm:$0xff]  ;;  %v310_v1 = vld [vmem:[#allocation2 + $0x30] sm:$0xff] }
   0xc   :  { %128 = vmatpush.bf16.msra.mxu0 %v311_v0  ;;  %v319_v2 = vld [vmem:[#allocation4 + $0x38] sm:$0xff]  ;;  %v318_v3 = vld [vmem:[#allocation4 + $0x30] sm:$0xff]  ;;  %v309_v4 = vld [vmem:[#allocation2 + $0x28] sm:$0xff] }
   0xd   :  { %213 = vmatpush.bf16.msra.mxu1 %v319_v2  ;;  %v317_v5 = vld [vmem:[#allocation4 + $0x28] sm:$0xff]  ;;  %v308_v6 = vld [vmem:[#allocation2 + $0x20] sm:$0xff]  ;;  %v307_v8 = vld [vmem:[#allocation2 + $0x18] sm:$0xff] }
   0xe   :  { %v316_v7 = vld [vmem:[#allocation4 + $0x20] sm:$0xff]  ;;  %v306_v9 = vld [vmem:[#allocation2 + $0x10] sm:$0xff]  ;;  %v305_v10 = vld [vmem:[#allocation2 + $0x8] sm:$0xff] }
   0xf   :  { %v304_v11 = vld [vmem:[#allocation2] sm:$0xff]  ;;  %v315_v13 = vld [vmem:[#allocation4 + $0x18] sm:$0xff]  ;;  %v314_v14 = vld [vmem:[#allocation4 + $0x10] sm:$0xff] }
  0x10   :  { %129 = vmatpush.bf16.msra.mxu0 %v310_v1  ;;  %v303_v12 = vld [vmem:[%s433_s0] sm:$0xff]  ;;  %v313_v15 = vld [vmem:[#allocation4 + $0x8] sm:$0xff] }
  0x11   :  { %214 = vmatpush.bf16.msra.mxu1 %v318_v3  ;;  %v312_v16 = vld [vmem:[#allocation4] sm:$0xff] }
  0x12   :  { %v324_v18 = vld [vmem:[%s435_s2] ss:$0 sm:$0xff] }
  0x13   :  { %v325_v25 = vld [vmem:[%s437_s4] ss:$0 sm:$0xff] }
  0x14   :  { %130 = vmatpush.bf16.msra.mxu0 %v309_v4 }
  0x15   :  { %215 = vmatpush.bf16.msra.mxu1 %v317_v5 }
  0x18   :  { %131 = vmatpush.bf16.msra.mxu0 %v308_v6 }
  0x19   :  { %216 = vmatpush.bf16.msra.mxu1 %v316_v7 }
  0x1c   :  { %132 = vmatpush.bf16.msra.mxu0 %v307_v8 }
  0x1d   :  { %217 = vmatpush.bf16.msra.mxu1 %v315_v13 }
  0x20   :  { %133 = vmatpush.bf16.msra.mxu0 %v306_v9 }
  0x21   :  { %218 = vmatpush.bf16.msra.mxu1 %v314_v14 }
  0x24   :  { %134 = vmatpush.bf16.msra.mxu0 %v305_v10 }
  0x25   :  { %219 = vmatpush.bf16.msra.mxu1 %v313_v15 }
  0x28   :  { %135 = vmatpush.bf16.msra.mxu0 %v304_v11 }
  0x29   :  { %220 = vmatpush.bf16.msra.mxu1 %v312_v16 }
  0x2b   :  { %136 = vmatmul.bf16.vlgmr.msra.gmra.mxu0 %v303_v12 }
  0xa8   :  { %v137_v17 = vpop.f32.mrf.mxu0 }
  0xa9   :  { %v138_v19 = vadd.f32 %v324_v18, %v137_v17 }
  0xab   :  { %v142_v22 = vmax.f32 %v138_v19, 0.0 }
  0xb0   :  { %v139_v20 = vpop.f32.mrf.mxu0 }
  0xb1   :  { %v140_v21 = vadd.f32 %v324_v18, %v139_v20 }
  0xb3   :  { %v143_v23 = vmax.f32 %v140_v21, 0.0 }
  0xb5   :  { %v144_v24 = vpack.c.bf16 %v143_v23, %v142_v22 }
  0xb7   :  { %221 = vmatmul.bf16.vlgmr.msra.gmra.mxu1 %v144_v24 }
 0x134   :  { %v222_v26 = vpop.f32.mrf.mxu1 }
 0x135   :  { %v223_v27 = vadd.f32 %v325_v25, %v222_v26 }
 0x137   :  { %227 = vst [vmem:[%s438_s5] sm:$0xff] %v223_v27 }
 0x13c   :  { %v224_v28 = vpop.f32.mrf.mxu1 }
 0x13d   :  { %v225_v29 = vadd.f32 %v325_v25, %v224_v28 }
 0x13f   :  { %228 = vst [vmem:[%s438_s5 + $0x8] sm:$0xff] %v225_v29 }
 0x140   :  { %233 = vsyncpa [#allocation3], 1 }
 0x141   :  { %234 = vsyncpa [#allocation5], 1 }

</bundles_post_ra>
